<compile_context>
chip_gen: v6e
topology: v6e:2x2x1
jax: 0.10.0
libtpu: 0.0.40
codegen_flags: <defaults>
</compile_context>

<pallas_src>
import functools

import jax
import jax.numpy as jnp
from jax.experimental import pallas as pl
from jax.experimental.pallas import tpu as pltpu


def _round_up(n, m):
    return (n + m - 1) // m * m


def _make_kernel(mxu_dtype):
    def kernel(xT_ref, w1t_ref, b1_ref, w2t_ref, b2_ref, w3t_ref, b3_ref, oT_ref):
        # All activations are feature-major: [features, batch_tile].
        xT = xT_ref[...].astype(mxu_dtype)

        # hidden layer 1: relu(W1^T @ x^T + b1)
        h1 = jnp.dot(w1t_ref[...].astype(mxu_dtype), xT,
                     preferred_element_type=jnp.float32)
        h1 = jnp.maximum(h1 + b1_ref[...], 0.0)

        # hidden layer 2: relu(W2^T @ h1 + b2)
        h2 = jnp.dot(w2t_ref[...].astype(mxu_dtype), h1.astype(mxu_dtype),
                     preferred_element_type=jnp.float32)
        h2 = jnp.maximum(h2 + b2_ref[...], 0.0)

        # output layer: W3^T @ h2 + b3   (no activation)
        out = jnp.dot(w3t_ref[...].astype(mxu_dtype), h2.astype(mxu_dtype),
                      preferred_element_type=jnp.float32)
        oT_ref[...] = (out + b3_ref[...]).astype(oT_ref.dtype)

    return kernel


@functools.partial(jax.jit, static_argnames=("tb", "mxu_dtype"))
def ann_forward(x, params, *, tb=1024, mxu_dtype=jnp.float32):
    """x: [B, 5] float32.  params: dict with w1,b1,w2,b2,w3,b3 (w: [in,out], b: [1,out])."""
    B, F = x.shape
    H1 = params["w1"].shape[1]   # 32
    H2 = params["w2"].shape[1]   # 32
    C = params["w3"].shape[1]    # 5 (num_classes)

    # Pad contraction dim of layer 1 to the 8-sublane granule (exact zeros).
    Fp = _round_up(F, 8)

    # Batch tile on the lane axis: multiple of 128, capped per generation
    # (default 1024 ~ <1 MiB of VMEM/step, safe on v5e/v6e/v7x).
    tb = max(128, min(int(tb), _round_up(B, 128)))
    Bp = _round_up(B, tb)
    grid = (Bp // tb,)

    # Feature-major operands (batch on the lane axis -> lane-dense in/out DMA).
    xT = jnp.zeros((Fp, Bp), x.dtype).at[:F, :B].set(x.T)
    w1t = jnp.zeros((H1, Fp), mxu_dtype).at[:, :F].set(params["w1"].T.astype(mxu_dtype))
    w2t = params["w2"].T.astype(mxu_dtype)
    w3t = params["w3"].T.astype(mxu_dtype)
    b1 = params["b1"].reshape(H1, 1).astype(jnp.float32)
    b2 = params["b2"].reshape(H2, 1).astype(jnp.float32)
    b3 = params["b3"].reshape(C, 1).astype(jnp.float32)

    flops = 2 * B * (F * H1 + H1 * H2 + H2 * C)
    bytes_accessed = 4 * (B * F + B * C) + 4 * (F * H1 + H1 + H1 * H2 + H2 + H2 * C + C)
    cost = pl.CostEstimate(flops=int(flops), transcendentals=0,
                           bytes_accessed=int(bytes_accessed))

    outT = pl.pallas_call(
        _make_kernel(mxu_dtype),
        out_shape=jax.ShapeDtypeStruct((C, Bp), jnp.float32),
        grid=grid,
        in_specs=[
            pl.BlockSpec((Fp, tb), lambda i: (0, i)),   # x^T tile (pipelined)
            pl.BlockSpec((H1, Fp), lambda i: (0, 0)),   # W1^T (resident)
            pl.BlockSpec((H1, 1), lambda i: (0, 0)),    # b1
            pl.BlockSpec((H2, H1), lambda i: (0, 0)),   # W2^T
            pl.BlockSpec((H2, 1), lambda i: (0, 0)),    # b2
            pl.BlockSpec((C, H2), lambda i: (0, 0)),    # W3^T
            pl.BlockSpec((C, 1), lambda i: (0, 0)),     # b3
        ],
        out_specs=pl.BlockSpec((C, tb), lambda i: (0, i)),  # lane-dense output
        compiler_params=pltpu.CompilerParams(dimension_semantics=("parallel",)),
        cost_estimate=cost,
    )(xT, w1t, b1, w2t, b2, w3t, b3)

    # Drop batch padding, return batch-major [B, C].
    return outT[:, :B].T


def init_params(key):
    """Deterministic init matching nn.Linear's default U(-1/sqrt(fan_in), 1/sqrt(fan_in))."""
    hidden_size, mid, num_classes = 5, 32, 5
    ks = jax.random.split(key, 6)

    def linear(kw, kb, fan_in, fan_out):
        bound = 1.0 / jnp.sqrt(jnp.float32(fan_in))
        w = jax.random.uniform(kw, (fan_in, fan_out), jnp.float32, -bound, bound)
        b = jax.random.uniform(kb, (1, fan_out), jnp.float32, -bound, bound)
        return w, b

    w1, b1 = linear(ks[0], ks[1], hidden_size, mid)
    w2, b2 = linear(ks[2], ks[3], mid, mid)
    w3, b3 = linear(ks[4], ks[5], mid, num_classes)
    return {"w1": w1, "b1": b1, "w2": w2, "b2": b2, "w3": w3, "b3": b3}


def ann_reference(x, p):
    """Pure-JAX reference of the same forward for a correctness check."""
    h1 = jnp.maximum(x @ p["w1"] + p["b1"], 0.0)
    h2 = jnp.maximum(h1 @ p["w2"] + p["b2"], 0.0)
    return h2 @ p["w3"] + p["b3"]


if __name__ == "__main__":
    key = jax.random.PRNGKey(0)
    kx, kp = jax.random.split(key)
    params = init_params(kp)

    # Small batch (single grid step).
    batch = 8
    x = jax.random.normal(kx, (batch, 5), dtype=jnp.float32)
    out = jax.block_until_ready(ann_forward(x, params))
    ref = ann_reference(x, params)
    assert out.shape == (batch, 5)
    assert jnp.allclose(out, ref, atol=1e-4, rtol=1e-4)

    # Larger batch, not a multiple of the tile, exercising the pipelined grid.
    x2 = jax.random.normal(jax.random.PRNGKey(1), (2500, 5), dtype=jnp.float32)
    out2 = jax.block_until_ready(ann_forward(x2, params, tb=1024))
    ref2 = ann_reference(x2, params)
    assert out2.shape == (2500, 5)
    assert jnp.allclose(out2, ref2, atol=1e-4, rtol=1e-4)

    # bf16 MXU-operand path (recommended on v6e/v7x); f32 accumulation kept.
    out_bf16 = jax.block_until_ready(
        ann_forward(x2, params, tb=1024, mxu_dtype=jnp.bfloat16))
    assert jnp.allclose(out_bf16, ref2, atol=1e-1, rtol=1e-1)

    print("KERNEL_OK")
</pallas_src>

<mosaic_0001>
module attributes {stable_mosaic.version = 11 : i64} {
  func.func @kernel(%arg0: i32, %arg1: memref<8x128xf32, #tpu.memory_space<vmem>>, %arg2: memref<32x8xf32, #tpu.memory_space<vmem>>, %arg3: memref<32x1xf32, #tpu.memory_space<vmem>>, %arg4: memref<32x32xf32, #tpu.memory_space<vmem>>, %arg5: memref<32x1xf32, #tpu.memory_space<vmem>>, %arg6: memref<5x32xf32, #tpu.memory_space<vmem>>, %arg7: memref<5x1xf32, #tpu.memory_space<vmem>>, %arg8: memref<5x128xf32, #tpu.memory_space<vmem>>) attributes {dimension_semantics = [#tpu.dimension_semantics<parallel>], iteration_bounds = array<i64: 1>, scalar_prefetch = 0 : i64, scratch_operands = 0 : i64, tpu.core_type = #tpu.core_type<tc>, window_params = [{transform_indices = @transform_0, window_bounds = array<i64: 8, 128>}, {pipeline_mode = #tpu.pipeline_mode<synchronous>, transform_indices = @transform_1, window_bounds = array<i64: 32, 8>}, {pipeline_mode = #tpu.pipeline_mode<synchronous>, transform_indices = @transform_2, window_bounds = array<i64: 32, 1>}, {pipeline_mode = #tpu.pipeline_mode<synchronous>, transform_indices = @transform_3, window_bounds = array<i64: 32, 32>}, {pipeline_mode = #tpu.pipeline_mode<synchronous>, transform_indices = @transform_4, window_bounds = array<i64: 32, 1>}, {pipeline_mode = #tpu.pipeline_mode<synchronous>, transform_indices = @transform_5, window_bounds = array<i64: 5, 32>}, {pipeline_mode = #tpu.pipeline_mode<synchronous>, transform_indices = @transform_6, window_bounds = array<i64: 5, 1>}, {transform_indices = @transform_7, window_bounds = array<i64: 5, 128>}]} {
    %c0 = arith.constant 0 : index
    %c0_0 = arith.constant 0 : index
    %0 = vector.load %arg1[%c0, %c0_0] : memref<8x128xf32, #tpu.memory_space<vmem>>, vector<8x128xf32>
    %c0_1 = arith.constant 0 : index
    %c0_2 = arith.constant 0 : index
    %1 = vector.load %arg2[%c0_1, %c0_2] : memref<32x8xf32, #tpu.memory_space<vmem>>, vector<32x8xf32>
    %cst = arith.constant dense<0.000000e+00> : vector<32x128xf32>
    %2 = tpu.matmul %1, %0, %cst {dimension_numbers = #tpu.dot_dimension_numbers<[1], [0], [0], [1], [0, 0, 1, 1], [], []>} : vector<32x8xf32>, vector<8x128xf32>, vector<32x128xf32> -> vector<32x128xf32>
    %c0_3 = arith.constant 0 : index
    %c0_4 = arith.constant 0 : index
    %3 = vector.load %arg3[%c0_3, %c0_4] : memref<32x1xf32, #tpu.memory_space<vmem>>, vector<32x1xf32>
    %4 = vector.broadcast %3 : vector<32x1xf32> to vector<32x128xf32>
    %5 = arith.addf %2, %4 : vector<32x128xf32>
    %cst_5 = arith.constant 0.000000e+00 : f32
    %6 = vector.broadcast %cst_5 : f32 to vector<32x128xf32>
    %7 = arith.maximumf %5, %6 : vector<32x128xf32>
    %c0_6 = arith.constant 0 : index
    %c0_7 = arith.constant 0 : index
    %8 = vector.load %arg4[%c0_6, %c0_7] : memref<32x32xf32, #tpu.memory_space<vmem>>, vector<32x32xf32>
    %cst_8 = arith.constant dense<0.000000e+00> : vector<32x128xf32>
    %9 = tpu.matmul %8, %7, %cst_8 {dimension_numbers = #tpu.dot_dimension_numbers<[1], [0], [0], [1], [0, 0, 1, 1], [], []>} : vector<32x32xf32>, vector<32x128xf32>, vector<32x128xf32> -> vector<32x128xf32>
    %c0_9 = arith.constant 0 : index
    %c0_10 = arith.constant 0 : index
    %10 = vector.load %arg5[%c0_9, %c0_10] : memref<32x1xf32, #tpu.memory_space<vmem>>, vector<32x1xf32>
    %11 = vector.broadcast %10 : vector<32x1xf32> to vector<32x128xf32>
    %12 = arith.addf %9, %11 : vector<32x128xf32>
    %cst_11 = arith.constant 0.000000e+00 : f32
    %13 = vector.broadcast %cst_11 : f32 to vector<32x128xf32>
    %14 = arith.maximumf %12, %13 : vector<32x128xf32>
    %c0_12 = arith.constant 0 : index
    %c0_13 = arith.constant 0 : index
    %15 = vector.load %arg6[%c0_12, %c0_13] : memref<5x32xf32, #tpu.memory_space<vmem>>, vector<5x32xf32>
    %cst_14 = arith.constant dense<0.000000e+00> : vector<5x128xf32>
    %16 = tpu.matmul %15, %14, %cst_14 {dimension_numbers = #tpu.dot_dimension_numbers<[1], [0], [0], [1], [0, 0, 1, 1], [], []>} : vector<5x32xf32>, vector<32x128xf32>, vector<5x128xf32> -> vector<5x128xf32>
    %c0_15 = arith.constant 0 : index
    %c0_16 = arith.constant 0 : index
    %17 = vector.load %arg7[%c0_15, %c0_16] : memref<5x1xf32, #tpu.memory_space<vmem>>, vector<5x1xf32>
    %18 = vector.broadcast %17 : vector<5x1xf32> to vector<5x128xf32>
    %19 = arith.addf %16, %18 : vector<5x128xf32>
    %c0_17 = arith.constant 0 : index
    %c0_18 = arith.constant 0 : index
    %20 = vector.load %arg8[%c0_17, %c0_18] : memref<5x128xf32, #tpu.memory_space<vmem>>, vector<5x128xf32>
    tpu.vector_store %arg8[%c0_17, %c0_18], %19 {strides = array<i32>} : memref<5x128xf32, #tpu.memory_space<vmem>>, vector<5x128xf32>,
    return
  }
  func.func @transform_0(%arg0: i32) -> (i32, i32) {
    %c0_i32 = arith.constant 0 : i32
    %c0_i32_0 = arith.constant 0 : i32
    return %c0_i32, %arg0 : i32, i32
  }
  func.func @transform_1(%arg0: i32) -> (i32, i32) {
    %c0_i32 = arith.constant 0 : i32
    %c0_i32_0 = arith.constant 0 : i32
    %c0_i32_1 = arith.constant 0 : i32
    return %c0_i32, %c0_i32_0 : i32, i32
  }
  func.func @transform_2(%arg0: i32) -> (i32, i32) {
    %c0_i32 = arith.constant 0 : i32
    %c0_i32_0 = arith.constant 0 : i32
    %c0_i32_1 = arith.constant 0 : i32
    return %c0_i32, %c0_i32_0 : i32, i32
  }
  func.func @transform_3(%arg0: i32) -> (i32, i32) {
    %c0_i32 = arith.constant 0 : i32
    %c0_i32_0 = arith.constant 0 : i32
    %c0_i32_1 = arith.constant 0 : i32
    return %c0_i32, %c0_i32_0 : i32, i32
  }
  func.func @transform_4(%arg0: i32) -> (i32, i32) {
    %c0_i32 = arith.constant 0 : i32
    %c0_i32_0 = arith.constant 0 : i32
    %c0_i32_1 = arith.constant 0 : i32
    return %c0_i32, %c0_i32_0 : i32, i32
  }
  func.func @transform_5(%arg0: i32) -> (i32, i32) {
    %c0_i32 = arith.constant 0 : i32
    %c0_i32_0 = arith.constant 0 : i32
    %c0_i32_1 = arith.constant 0 : i32
    return %c0_i32, %c0_i32_0 : i32, i32
  }
  func.func @transform_6(%arg0: i32) -> (i32, i32) {
    %c0_i32 = arith.constant 0 : i32
    %c0_i32_0 = arith.constant 0 : i32
    %c0_i32_1 = arith.constant 0 : i32
    return %c0_i32, %c0_i32_0 : i32, i32
  }
  func.func @transform_7(%arg0: i32) -> (i32, i32) {
    %c0_i32 = arith.constant 0 : i32
    %c0_i32_0 = arith.constant 0 : i32
    return %c0_i32, %arg0 : i32, i32
  }
}

</mosaic_0001>

<bundles_post_ra>
// kernel: ann_forward.1
= control target key start
LH: loop header
LB: loop body
LE: loop exit
PB: predicated region body
PF: predicated region fallthrough
CT: control target
= control target key end

     0   :  { %vm55_vm0 = vcmask 64512   ;;  %v437_v3 = vmov 0   ;;  %vm185_vm1 = vcmask 261120   ;;  %v438_v35 = vmov 0.0   ;;  %s549_s0 = inlined_call_operand.vmem [shape: f32[8,128], index: 0, kind: input, shape index: {}]   ;;  %s550_s1 = inlined_call_operand.vmem [shape: f32[32,8], index: 1, kind: input, shape index: {}]   ;;  %s551_s2 = inlined_call_operand.vmem [shape: f32[32,1], index: 2, kind: input, shape index: {}]   ;;  %s552_s4 = inlined_call_operand.vmem [shape: f32[32,1], index: 4, kind: input, shape index: {}]   ;;  %s553_s6 = inlined_call_operand.vmem [shape: f32[5,1], index: 6, kind: input, shape index: {}]   ;;  %s554_s3 = inlined_call_operand.vmem [shape: f32[32,32], index: 3, kind: input, shape index: {}]   ;;  %s555_s5 = inlined_call_operand.vmem [shape: f32[5,32], index: 5, kind: input, shape index: {}]   ;;  %s556_s7 = inlined_call_operand.vmem [shape: f32[5,128], index: 7, kind: output, shape index: {}]  }
   0x1   :  { %v26_v0 = vld [vmem:[%s549_s0] sm:$0xff]  ;;  %v28_v2 = vld [vmem:[%s550_s1 + $0x8] sm:$0xff]  ;;  %435 = vset.pattern.permute.xlu0 %v437_v3  ;;  %436 = vset.pattern.permute.xlu1 %v437_v3  ;;  %v29_v4 = vld [vmem:[%s550_s1 + $0x10] sm:$0xff]  ;;  %vm439_vm2 = vmmov 0  }
   0x2   :  { %v27_v1 = vld [vmem:[%s550_s1] sm:$0xff]  ;;  %399 = vmatprep.subr.mxu0 %v26_v0  ;;  %v34_v5 = vld [vmem:[%s551_s2 + $0x18] sm:$0xff]  ;;  %v32_v6 = vld [vmem:[%s551_s2 + $0x8] sm:$0xff] }
   0x3   :  { %401 = vmatprep.mubr.msk.f32.mxu0 %vm55_vm0, %v27_v1  ;;  %400 = vmatpush3.msra.mxu0 %v26_v0  ;;  %v33_v7 = vld [vmem:[%s551_s2 + $0x10] sm:$0xff]  ;;  %v30_v8 = vld [vmem:[%s550_s1 + $0x18] sm:$0xff]  ;;  %v31_v9 = vld [vmem:[%s551_s2] sm:$0xff] }
   0x4   :  { %52 = vperm.xlu0 %435, %v34_v5   ;;  %402 = vmatmul.mubr.msk.f32.vlgmr.msra.gmra.mxu0 %vm55_vm0, %v28_v2  ;;  %v164_v10 = vld [vmem:[%s552_s4 + $0x18] sm:$0xff]  ;;  %v163_v11 = vld [vmem:[%s552_s4 + $0x10] sm:$0xff]  ;;  %v162_v12 = vld [vmem:[%s552_s4 + $0x8] sm:$0xff] }
   0x5   :  { %42 = vperm.xlu1 %436, %v32_v6   ;;  %404 = vmatprep.mubr.msk.f32.mxu0 %vm55_vm0, %v29_v4  ;;  %v161_v13 = vld [vmem:[%s552_s4] sm:$0xff]  ;;  %v158_v32 = vld [vmem:[%s554_s3 + $0x8] sm:$0xff]  ;;  %v159_v33 = vld [vmem:[%s554_s3 + $0x10] sm:$0xff] }
   0x6   :  { %v288_v14 = vld [vmem:[%s553_s6] sm:$0x1f]  ;;  %v160_v34 = vld [vmem:[%s554_s3 + $0x18] sm:$0xff]  ;;  %421 = vmatprep.subr.mxu0 %v438_v35 }
   0x7   :  { %v157_v15 = vld [vmem:[%s554_s3] sm:$0xff] }
   0x8   :  { %47 = vperm.xlu0 %435, %v33_v7   ;;  %405 = vmatmul.mubr.msk.f32.gmra.mxu0 %vm55_vm0, %v30_v8  ;;  %v287_v52 = vld [vmem:[%s555_s5] sm:$0x1f] }
   0x9   :  { %37 = vperm.xlu1 %436, %v31_v9   ;;  %415 = vmatprep.mubr.msk.f32.mxu1 %vm185_vm1, %v157_v15 }
   0xa   :  { %429 = vmatprep.mubr.msk.f32.mxu0 %vm439_vm2, %v438_v35 }
   0xc   :  { %182 = vperm.xlu0 %435, %v164_v10  }
   0xd   :  { %177 = vperm.xlu1 %436, %v163_v11  }
  0x10   :  { %172 = vperm.xlu0 %435, %v162_v12  }
  0x11   :  { %167 = vperm.xlu1 %436, %v161_v13  }
  0x14   :  { %291 = vperm.xlu0 %435, %v288_v14  }
  0x7f   :  { %v53_v16 = vpop.permute.xlu0 %52 }
  0x80   :  { %v43_v18 = vpop.permute.xlu1 %42 }
  0x83   :  { %v48_v22 = vpop.permute.xlu0 %47 }
  0x84   :  { %v38_v27 = vpop.permute.xlu1 %37 }
  0x87   :  { %v183_v36 = vpop.permute.xlu0 %182 }
  0x88   :  { %v178_v38 = vpop.permute.xlu1 %177 }
  0x8b   :  { %v173_v42 = vpop.permute.xlu0 %172 }
  0x8c   :  { %v168_v47 = vpop.permute.xlu1 %167 }
  0x8f   :  { %v292_v53 = vpop.permute.xlu0 %291 }
  0xc4   :  { %v403_v17 = vpop.f32.mrf.mxu0 }
  0xc5   :  { %v140_v24 = vadd.f32 %v403_v17, %v43_v18 }
  0xc6   :  { %v134_v19 = vpop.f32.mrf.mxu0 }
  0xc7   :  { %v135_v28 = vadd.f32 %v134_v19, %v38_v27  ;;  %v154_v30 = vmax.f32 %v140_v24, 0.0 }
  0xc8   :  { %v406_v20 = vpop.f32.mrf.mxu0 }
  0xc9   :  { %v150_v21 = vadd.f32 %v406_v20, %v53_v16  ;;  %v153_v31 = vmax.f32 %v135_v28, 0.0 }
  0xca   :  { %v144_v23 = vpop.f32.mrf.mxu0 }
  0xcb   :  { %v156_v25 = vmax.f32 %v150_v21, 0.0  ;;  %v145_v26 = vadd.f32 %v144_v23, %v48_v22 }
  0xcd   :  { %v155_v29 = vmax.f32 %v145_v26, 0.0  ;;  %407 = vmatprep.subr.mxu1 %v156_v25 }
  0xce   :  { %408 = vmatpush3.msra.mxu1 %v156_v25 }
  0xcf   :  { %409 = vmatprep.subr.mxu1 %v155_v29 }
  0xd0   :  { %410 = vmatpush3.msra.mxu1 %v155_v29 }
  0xd1   :  { %411 = vmatprep.subr.mxu1 %v154_v30 }
  0xd2   :  { %412 = vmatpush3.msra.mxu1 %v154_v30 }
  0xd3   :  { %413 = vmatprep.subr.mxu1 %v153_v31 }
  0xd4   :  { %414 = vmatpush3.msra.mxu1 %v153_v31 }
  0xd5   :  { %416 = vmatmul.mubr.msk.f32.vlgmr.msra.gmra.mxu1 %vm185_vm1, %v158_v32 }
  0xd6   :  { %418 = vmatprep.mubr.msk.f32.mxu1 %vm185_vm1, %v159_v33 }
  0xd9   :  { %419 = vmatmul.mubr.msk.f32.gmra.mxu1 %vm185_vm1, %v160_v34 }
 0x195   :  { %v417_v37 = vpop.f32.mrf.mxu1 }
 0x196   :  { %v270_v44 = vadd.f32 %v417_v37, %v173_v42 }
 0x197   :  { %v264_v39 = vpop.f32.mrf.mxu1 }
 0x198   :  { %v265_v48 = vadd.f32 %v264_v39, %v168_v47  ;;  %v284_v50 = vmax.f32 %v270_v44, 0.0 }
 0x199   :  { %v420_v40 = vpop.f32.mrf.mxu1 }
 0x19a   :  { %v280_v41 = vadd.f32 %v420_v40, %v183_v36  ;;  %v283_v51 = vmax.f32 %v265_v48, 0.0 }
 0x19b   :  { %v274_v43 = vpop.f32.mrf.mxu1 }
 0x19c   :  { %v286_v45 = vmax.f32 %v280_v41, 0.0  ;;  %v275_v46 = vadd.f32 %v274_v43, %v178_v38 }
 0x19e   :  { %v285_v49 = vmax.f32 %v275_v46, 0.0  ;;  %422 = vmatpush3.msra.mxu0 %v286_v45 }
 0x19f   :  { %423 = vmatprep.subr.mxu0 %v438_v35 }
 0x1a0   :  { %424 = vmatpush3.msra.mxu0 %v285_v49 }
 0x1a1   :  { %425 = vmatprep.subr.mxu0 %v438_v35 }
 0x1a2   :  { %426 = vmatpush3.msra.mxu0 %v284_v50 }
 0x1a3   :  { %427 = vmatprep.subr.mxu0 %v438_v35 }
 0x1a4   :  { %428 = vmatpush3.msra.mxu0 %v283_v51 }
 0x1a5   :  { %430 = vmatmul.mubr.msk.f32.vlgmr.msra.gmra.mxu0 %vm185_vm1, %v287_v52 }
 0x265   :  { %v363_v54 = vpop.f32.mrf.mxu0 }
 0x266   :  { %v364_v55 = vadd.f32 %v363_v54, %v292_v53 }
 0x267   :  { %v431_v56 = vpop.f32.mrf.mxu0 }
 0x268   :  { %367 = vst [vmem:[%s556_s7] sm:$0x1f] %v364_v55 }

</bundles_post_ra>
